<compile_context>
chip_gen: v6e
topology: v6e:2x2x1
jax: 0.10.0
libtpu: 0.0.40
codegen_flags: <defaults>
</compile_context>

<pallas_src>
import jax
import jax.numpy as jnp
from jax import lax
from jax.experimental import pallas as pl
from jax.experimental.pallas import tpu as pltpu

GAP = 128  # lane gap between sequences in the scratch slab (128-aligned, >= 2*P)


def _round_up(v, m):
    return (v + m - 1) // m * m


def _pick_channel_pad(C):
    """Sublane-align C; round to a multiple of 128 only when cheap (the v5e MXU
    contracts 128 at a time, so a ragged contraction wastes a partial pass)."""
    cp8 = _round_up(C, 8)
    cp128 = _round_up(C, 128)
    if cp128 <= max(cp8 + 32, (cp8 * 5) // 4):
        return cp128
    return cp8


def _pick_batch_block(N, Cp, Lp, x_bytes):
    """Sequences per grid step: amortize per-step overhead / widen the matmul
    lane extent while keeping the double-buffered x/out blocks modest."""
    budget = 16 * 1024 * 1024
    cap = max(1, budget // max(1, 4 * Cp * Lp * x_bytes))
    cap = min(cap, 8, N)
    nb = 1
    for d in range(1, cap + 1):
        if N % d == 0:
            nb = d
    return nb


def _make_kernel(K, P, L, Lp, Nb, stride, compute_dtype):
    W_out = Nb * stride - GAP                       # interiors + inter-seq gaps
    base = [GAP + n * stride for n in range(Nb)]    # interior start per sequence

    def kernel(x_ref, w1_ref, b1_ref, w2_ref, b2_ref, o_ref, pad_ref):
        Cp = pad_ref.shape[0]

        # Zero the gap columns (left halo of seq 0, inter-sequence gaps, right
        # halo of the last seq).  The interiors are fully overwritten every
        # step, so only the gaps need (re-)zeroing; re-zeroing each step keeps
        # the kernel megacore-safe.  Deep-gap columns only feed discarded
        # output columns, but zeroing the whole 128-wide gaps is cheap and
        # keeps the invariant simple.
        gap_zeros = jnp.zeros((Cp, GAP), compute_dtype)
        pad_ref[:, :GAP] = gap_zeros
        for n in range(Nb):
            pad_ref[:, base[n] + Lp:base[n] + Lp + GAP] = gap_zeros

        if Lp != L:
            # Columns >= true length must be zero going into the second conv.
            length_mask = lax.broadcasted_iota(jnp.int32, (1, Lp), 1) < L
        else:
            length_mask = None

        def conv(w_ref, b_ref):
            # K accumulating MXU dots with f32 accumulation; one lane-aligned
            # (Cp, Cp) weight tile per tap.  The accumulator starts as the
            # broadcast bias.  (Optional refinement: dot against the 128-aligned
            # interior span only and shift each tap's f32 output with
            # pltpu.roll + a boundary mask, moving the +-t lane shift to the
            # idle XLU slot.)
            acc = jnp.broadcast_to(b_ref[...], (Cp, W_out))
            for t in range(K):
                s = GAP - P + t
                acc = acc + jnp.dot(w_ref[t], pad_ref[:, s:s + W_out],
                                    preferred_element_type=jnp.float32)
            return acc

        # ---- conv1 over ReLU(x): write ReLU(x) into each sequence interior ----
        for n in range(Nb):
            pad_ref[:, base[n]:base[n] + Lp] = jnp.maximum(
                x_ref[n], 0.0).astype(compute_dtype)
        h1 = conv(w1_ref, b1_ref)

        # ---- ReLU + length mask, written straight back into the interiors ----
        # (gaps are never written, so they stay zero and conv2 sees correct
        #  zero padding at every sequence boundary)
        h1 = jnp.maximum(h1, 0.0)
        for n in range(Nb):
            seg = h1[:, n * stride:n * stride + Lp]
            if length_mask is not None:
                seg = jnp.where(length_mask, seg, 0.0)
            pad_ref[:, base[n]:base[n] + Lp] = seg.astype(compute_dtype)

        # ---- conv2 + residual (x re-read only here) ----
        h2 = conv(w2_ref, b2_ref)
        for n in range(Nb):
            o_ref[n, :, :] = (x_ref[n].astype(jnp.float32)
                              + h2[:, n * stride:n * stride + Lp]
                              ).astype(o_ref.dtype)

    return kernel


def dpcnn_residual_block(x, w1, b1, w2, b2, *, padding,
                         compute_dtype=jnp.bfloat16):
    """x: (N, C, L); w*: (C, C, K); b*: (C,). Returns (N, C, L) in x.dtype."""
    N, C, L = x.shape
    K = w1.shape[-1]
    P = padding
    assert 2 * P == K - 1, "residual add requires 'same' length output"
    assert P < GAP

    Cp = _pick_channel_pad(C)
    Lp = _round_up(L, 128)
    x_bytes = jnp.dtype(x.dtype).itemsize
    c_bytes = jnp.dtype(compute_dtype).itemsize

    Nb = _pick_batch_block(N, Cp, Lp, x_bytes)
    stride = Lp + GAP                       # per-sequence lane stride in the slab
    Wtot = GAP + Nb * stride                # leading gap + Nb * (interior + gap)
    W_out = Nb * stride - GAP

    # Fast path: skip host-side pad / output slice (full-tensor HBM round trips
    # outside the kernel) when the shape is already tile-aligned.
    pad_c, pad_l = Cp - C, Lp - L
    xp = jnp.pad(x, ((0, 0), (0, pad_c), (0, pad_l))) if (pad_c or pad_l) else x

    def prep_w(w):
        # (C_out, C_in, K) -> (K, Cp, Cp): one lane-aligned weight tile per tap.
        wp = jnp.pad(w, ((0, pad_c), (0, pad_c), (0, 0))) if pad_c else w
        return jnp.transpose(wp, (2, 0, 1)).astype(compute_dtype)

    w1p, w2p = prep_w(w1), prep_w(w2)
    b1p = (jnp.pad(b1, (0, pad_c)) if pad_c else b1).reshape(Cp, 1).astype(jnp.float32)
    b2p = (jnp.pad(b2, (0, pad_c)) if pad_c else b2).reshape(Cp, 1).astype(jnp.float32)

    kernel = _make_kernel(K, P, L, Lp, Nb, stride, compute_dtype)

    grid_spec = pltpu.PrefetchScalarGridSpec(
        num_scalar_prefetch=0,
        grid=(N // Nb,),
        in_specs=[
            pl.BlockSpec((Nb, Cp, Lp), lambda i: (i, 0, 0)),   # x block (Nb seqs)
            pl.BlockSpec((K, Cp, Cp), lambda i: (0, 0, 0)),    # w1 (resident)
            pl.BlockSpec((Cp, 1), lambda i: (0, 0)),           # b1
            pl.BlockSpec((K, Cp, Cp), lambda i: (0, 0, 0)),    # w2 (resident)
            pl.BlockSpec((Cp, 1), lambda i: (0, 0)),           # b2
        ],
        out_specs=pl.BlockSpec((Nb, Cp, Lp), lambda i: (i, 0, 0)),
        scratch_shapes=[pltpu.VMEM((Cp, Wtot), compute_dtype)],
    )

    # Explicit VMEM budget (instead of the 32 MiB scoped default) sized from
    # the per-step working set: scratch slab + double-buffered x/out blocks +
    # resident weights/biases + f32 conv temporaries.
    need = (Cp * Wtot * c_bytes
            + 4 * Nb * Cp * Lp * x_bytes
            + 4 * K * Cp * Cp * c_bytes + 4 * Cp * 4
            + 3 * Cp * W_out * 4)
    vmem_limit = int(min(max(need * 3 // 2, 32 * 1024 * 1024), 96 * 1024 * 1024))

    cost = pl.CostEstimate(
        flops=4 * K * Cp * Cp * W_out * (N // Nb),   # 2 convs * K taps * 2*C^2*W
        transcendentals=0,
        bytes_accessed=(2 * N * Cp * Lp * x_bytes    # x in + out
                        + 2 * K * Cp * Cp * c_bytes  # two weight stacks
                        + 2 * Cp * 4),               # biases
    )

    out = pl.pallas_call(
        kernel,
        out_shape=jax.ShapeDtypeStruct((N, Cp, Lp), x.dtype),
        grid_spec=grid_spec,
        compiler_params=pltpu.CompilerParams(
            dimension_semantics=("parallel",),
            vmem_limit_bytes=vmem_limit),
        cost_estimate=cost,
    )(xp, w1p, b1p, w2p, b2p)

    return out[:, :C, :L] if (pad_c or pad_l) else out


def _reference(x, w1, b1, w2, b2, padding):
    """Plain-JAX reference matching PyTorch Conv1d semantics."""
    dn = lax.conv_dimension_numbers(x.shape, w1.shape, ("NCW", "OIW", "NCW"))

    def conv(h, w, b):
        y = lax.conv_general_dilated(
            h, w, window_strides=(1,), padding=[(padding, padding)],
            dimension_numbers=dn)
        return y + b[None, :, None]

    h = conv(jnp.maximum(x, 0.0), w1, b1)
    h = conv(jnp.maximum(h, 0.0), w2, b2)
    return x + h


if __name__ == "__main__":
    # Small shapes consistent with the module: batch=2, channels=4, seq len=16.
    N, C, L = 2, 4, 16
    K, P = 3, 1  # kernel_size=3, padding=1

    key = jax.random.PRNGKey(0)
    kx, kw1, kb1, kw2, kb2 = jax.random.split(key, 5)

    x = jax.random.normal(kx, (N, C, L), dtype=jnp.float32)
    # PyTorch-like init scale: U(-bound, bound), bound = 1/sqrt(C*K)
    bound = 1.0 / jnp.sqrt(jnp.float32(C * K))
    w1 = jax.random.uniform(kw1, (C, C, K), jnp.float32, -bound, bound)
    b1 = jax.random.uniform(kb1, (C,), jnp.float32, -bound, bound)
    w2 = jax.random.uniform(kw2, (C, C, K), jnp.float32, -bound, bound)
    b2 = jax.random.uniform(kb2, (C,), jnp.float32, -bound, bound)

    ref = _reference(x, w1, b1, w2, b2, P)

    # float32 MXU operands: strict check against the reference.
    out_f32 = jax.block_until_ready(
        dpcnn_residual_block(x, w1, b1, w2, b2, padding=P,
                             compute_dtype=jnp.float32))
    assert out_f32.shape == (N, C, L)
    assert jnp.allclose(out_f32, ref, atol=1e-5, rtol=1e-5), "f32 mismatch"

    # bfloat16 MXU operands (default), f32 accumulation.
    out_bf16 = jax.block_until_ready(
        dpcnn_residual_block(x, w1, b1, w2, b2, padding=P))
    assert out_bf16.shape == (N, C, L)
    assert jnp.allclose(out_bf16, ref, atol=3e-2, rtol=3e-2), "bf16 mismatch"

    print("KERNEL_OK")
</pallas_src>

<mosaic_0001>
module attributes {stable_mosaic.version = 11 : i64} {
  func.func @kernel(%arg0: i32, %arg1: memref<2x8x128xf32, #tpu.memory_space<vmem>>, %arg2: memref<3x8x8xf32, #tpu.memory_space<vmem>>, %arg3: memref<8x1xf32, #tpu.memory_space<vmem>>, %arg4: memref<3x8x8xf32, #tpu.memory_space<vmem>>, %arg5: memref<8x1xf32, #tpu.memory_space<vmem>>, %arg6: memref<2x8x128xf32, #tpu.memory_space<vmem>>, %arg7: memref<8x640xf32, #tpu.memory_space<vmem>>) attributes {dimension_semantics = [#tpu.dimension_semantics<parallel>], iteration_bounds = array<i64: 1>, scalar_prefetch = 0 : i64, scratch_operands = 1 : i64, tpu.core_type = #tpu.core_type<tc>, window_params = [{transform_indices = @transform_0, window_bounds = array<i64: 2, 8, 128>}, {pipeline_mode = #tpu.pipeline_mode<synchronous>, transform_indices = @transform_1, window_bounds = array<i64: 3, 8, 8>}, {pipeline_mode = #tpu.pipeline_mode<synchronous>, transform_indices = @transform_2, window_bounds = array<i64: 8, 1>}, {pipeline_mode = #tpu.pipeline_mode<synchronous>, transform_indices = @transform_3, window_bounds = array<i64: 3, 8, 8>}, {pipeline_mode = #tpu.pipeline_mode<synchronous>, transform_indices = @transform_4, window_bounds = array<i64: 8, 1>}, {transform_indices = @transform_5, window_bounds = array<i64: 2, 8, 128>}]} {
    %cst = arith.constant 0.000000e+00 : f32
    %0 = vector.broadcast %cst : f32 to vector<8x128xf32>
    %c0 = arith.constant 0 : index
    %c0_0 = arith.constant 0 : index
    %1 = vector.load %arg7[%c0, %c0_0] : memref<8x640xf32, #tpu.memory_space<vmem>>, vector<8x128xf32>
    tpu.vector_store %arg7[%c0, %c0_0], %0 {strides = array<i32>} : memref<8x640xf32, #tpu.memory_space<vmem>>, vector<8x128xf32>,
    %c0_1 = arith.constant 0 : index
    %c256 = arith.constant 256 : index
    %2 = vector.load %arg7[%c0_1, %c256] : memref<8x640xf32, #tpu.memory_space<vmem>>, vector<8x128xf32>
    tpu.vector_store %arg7[%c0_1, %c256], %0 {strides = array<i32>} : memref<8x640xf32, #tpu.memory_space<vmem>>, vector<8x128xf32>,
    %c0_2 = arith.constant 0 : index
    %c512 = arith.constant 512 : index
    %3 = vector.load %arg7[%c0_2, %c512] : memref<8x640xf32, #tpu.memory_space<vmem>>, vector<8x128xf32>
    tpu.vector_store %arg7[%c0_2, %c512], %0 {strides = array<i32>} : memref<8x640xf32, #tpu.memory_space<vmem>>, vector<8x128xf32>,
    %4 = tpu.iota {dimensions = array<i32: 1>} : vector<1x128xi32>
    %c16_i32 = arith.constant 16 : i32
    %5 = vector.broadcast %c16_i32 : i32 to vector<1x128xi32>
    %6 = arith.cmpi slt, %4, %5 : vector<1x128xi32>
    %c0_3 = arith.constant 0 : index
    %c0_4 = arith.constant 0 : index
    %c0_5 = arith.constant 0 : index
    %7 = vector.load %arg1[%c0_3, %c0_4, %c0_5] : memref<2x8x128xf32, #tpu.memory_space<vmem>>, vector<1x8x128xf32>
    %8 = vector.shape_cast %7 : vector<1x8x128xf32> to vector<8x128xf32>
    %cst_6 = arith.constant 0.000000e+00 : f32
    %9 = vector.broadcast %cst_6 : f32 to vector<8x128xf32>
    %10 = arith.maximumf %8, %9 : vector<8x128xf32>
    %c0_7 = arith.constant 0 : index
    %c128 = arith.constant 128 : index
    %11 = vector.load %arg7[%c0_7, %c128] : memref<8x640xf32, #tpu.memory_space<vmem>>, vector<8x128xf32>
    tpu.vector_store %arg7[%c0_7, %c128], %10 {strides = array<i32>} : memref<8x640xf32, #tpu.memory_space<vmem>>, vector<8x128xf32>,
    %c1 = arith.constant 1 : index
    %c0_8 = arith.constant 0 : index
    %c0_9 = arith.constant 0 : index
    %12 = vector.load %arg1[%c1, %c0_8, %c0_9] : memref<2x8x128xf32, #tpu.memory_space<vmem>>, vector<1x8x128xf32>
    %13 = vector.shape_cast %12 : vector<1x8x128xf32> to vector<8x128xf32>
    %cst_10 = arith.constant 0.000000e+00 : f32
    %14 = vector.broadcast %cst_10 : f32 to vector<8x128xf32>
    %15 = arith.maximumf %13, %14 : vector<8x128xf32>
    %c0_11 = arith.constant 0 : index
    %c384 = arith.constant 384 : index
    %16 = vector.load %arg7[%c0_11, %c384] : memref<8x640xf32, #tpu.memory_space<vmem>>, vector<8x128xf32>
    tpu.vector_store %arg7[%c0_11, %c384], %15 {strides = array<i32>} : memref<8x640xf32, #tpu.memory_space<vmem>>, vector<8x128xf32>,
    %c0_12 = arith.constant 0 : index
    %c0_13 = arith.constant 0 : index
    %17 = vector.load %arg3[%c0_12, %c0_13] : memref<8x1xf32, #tpu.memory_space<vmem>>, vector<8x1xf32>
    %18 = vector.shape_cast %17 : vector<8x1xf32> to vector<8x1xf32>
    %19 = vector.broadcast %18 : vector<8x1xf32> to vector<8x384xf32>
    %c0_14 = arith.constant 0 : index
    %c0_15 = arith.constant 0 : index
    %c0_16 = arith.constant 0 : index
    %20 = vector.load %arg2[%c0_14, %c0_15, %c0_16] : memref<3x8x8xf32, #tpu.memory_space<vmem>>, vector<1x8x8xf32>
    %21 = vector.shape_cast %20 : vector<1x8x8xf32> to vector<8x8xf32>
    %c0_17 = arith.constant 0 : index
    %c127 = arith.constant 127 : index
    %22 = vector.load %arg7[%c0_17, %c127] : memref<8x640xf32, #tpu.memory_space<vmem>>, vector<8x384xf32>
    %cst_18 = arith.constant dense<0.000000e+00> : vector<8x384xf32>
    %23 = tpu.matmul %21, %22, %cst_18 {dimension_numbers = #tpu.dot_dimension_numbers<[1], [0], [0], [1], [0, 0, 1, 1], [], []>} : vector<8x8xf32>, vector<8x384xf32>, vector<8x384xf32> -> vector<8x384xf32>
    %24 = arith.addf %19, %23 : vector<8x384xf32>
    %c1_19 = arith.constant 1 : index
    %c0_20 = arith.constant 0 : index
    %c0_21 = arith.constant 0 : index
    %25 = vector.load %arg2[%c1_19, %c0_20, %c0_21] : memref<3x8x8xf32, #tpu.memory_space<vmem>>, vector<1x8x8xf32>
    %26 = vector.shape_cast %25 : vector<1x8x8xf32> to vector<8x8xf32>
    %c0_22 = arith.constant 0 : index
    %c128_23 = arith.constant 128 : index
    %27 = vector.load %arg7[%c0_22, %c128_23] : memref<8x640xf32, #tpu.memory_space<vmem>>, vector<8x384xf32>
    %cst_24 = arith.constant dense<0.000000e+00> : vector<8x384xf32>
    %28 = tpu.matmul %26, %27, %cst_24 {dimension_numbers = #tpu.dot_dimension_numbers<[1], [0], [0], [1], [0, 0, 1, 1], [], []>} : vector<8x8xf32>, vector<8x384xf32>, vector<8x384xf32> -> vector<8x384xf32>
    %29 = arith.addf %24, %28 : vector<8x384xf32>
    %c2 = arith.constant 2 : index
    %c0_25 = arith.constant 0 : index
    %c0_26 = arith.constant 0 : index
    %30 = vector.load %arg2[%c2, %c0_25, %c0_26] : memref<3x8x8xf32, #tpu.memory_space<vmem>>, vector<1x8x8xf32>
    %31 = vector.shape_cast %30 : vector<1x8x8xf32> to vector<8x8xf32>
    %c0_27 = arith.constant 0 : index
    %c129 = arith.constant 129 : index
    %32 = vector.load %arg7[%c0_27, %c129] : memref<8x640xf32, #tpu.memory_space<vmem>>, vector<8x384xf32>
    %cst_28 = arith.constant dense<0.000000e+00> : vector<8x384xf32>
    %33 = tpu.matmul %31, %32, %cst_28 {dimension_numbers = #tpu.dot_dimension_numbers<[1], [0], [0], [1], [0, 0, 1, 1], [], []>} : vector<8x8xf32>, vector<8x384xf32>, vector<8x384xf32> -> vector<8x384xf32>
    %34 = arith.addf %29, %33 : vector<8x384xf32>
    %cst_29 = arith.constant 0.000000e+00 : f32
    %35 = vector.broadcast %cst_29 : f32 to vector<8x384xf32>
    %36 = arith.maximumf %34, %35 : vector<8x384xf32>
    %37 = vector.extract_strided_slice %36 {offsets = [0, 0], sizes = [8, 128], strides = [1, 1]} : vector<8x384xf32> to vector<8x128xf32>
    %cst_30 = arith.constant 0.000000e+00 : f32
    %38 = vector.shape_cast %6 : vector<1x128xi1> to vector<1x128xi1>
    %39 = vector.broadcast %38 : vector<1x128xi1> to vector<8x128xi1>
    %40 = vector.broadcast %cst_30 : f32 to vector<8x128xf32>
    %41 = arith.select %39, %37, %40 : vector<8x128xi1>, vector<8x128xf32>
    %c0_31 = arith.constant 0 : index
    %c128_32 = arith.constant 128 : index
    %42 = vector.load %arg7[%c0_31, %c128_32] : memref<8x640xf32, #tpu.memory_space<vmem>>, vector<8x128xf32>
    tpu.vector_store %arg7[%c0_31, %c128_32], %41 {strides = array<i32>} : memref<8x640xf32, #tpu.memory_space<vmem>>, vector<8x128xf32>,
    %43 = vector.extract_strided_slice %36 {offsets = [0, 256], sizes = [8, 128], strides = [1, 1]} : vector<8x384xf32> to vector<8x128xf32>
    %cst_33 = arith.constant 0.000000e+00 : f32
    %44 = vector.shape_cast %6 : vector<1x128xi1> to vector<1x128xi1>
    %45 = vector.broadcast %44 : vector<1x128xi1> to vector<8x128xi1>
    %46 = vector.broadcast %cst_33 : f32 to vector<8x128xf32>
    %47 = arith.select %45, %43, %46 : vector<8x128xi1>, vector<8x128xf32>
    %c0_34 = arith.constant 0 : index
    %c384_35 = arith.constant 384 : index
    %48 = vector.load %arg7[%c0_34, %c384_35] : memref<8x640xf32, #tpu.memory_space<vmem>>, vector<8x128xf32>
    tpu.vector_store %arg7[%c0_34, %c384_35], %47 {strides = array<i32>} : memref<8x640xf32, #tpu.memory_space<vmem>>, vector<8x128xf32>,
    %c0_36 = arith.constant 0 : index
    %c0_37 = arith.constant 0 : index
    %49 = vector.load %arg5[%c0_36, %c0_37] : memref<8x1xf32, #tpu.memory_space<vmem>>, vector<8x1xf32>
    %50 = vector.shape_cast %49 : vector<8x1xf32> to vector<8x1xf32>
    %51 = vector.broadcast %50 : vector<8x1xf32> to vector<8x384xf32>
    %c0_38 = arith.constant 0 : index
    %c0_39 = arith.constant 0 : index
    %c0_40 = arith.constant 0 : index
    %52 = vector.load %arg4[%c0_38, %c0_39, %c0_40] : memref<3x8x8xf32, #tpu.memory_space<vmem>>, vector<1x8x8xf32>
    %53 = vector.shape_cast %52 : vector<1x8x8xf32> to vector<8x8xf32>
    %c0_41 = arith.constant 0 : index
    %c127_42 = arith.constant 127 : index
    %54 = vector.load %arg7[%c0_41, %c127_42] : memref<8x640xf32, #tpu.memory_space<vmem>>, vector<8x384xf32>
    %cst_43 = arith.constant dense<0.000000e+00> : vector<8x384xf32>
    %55 = tpu.matmul %53, %54, %cst_43 {dimension_numbers = #tpu.dot_dimension_numbers<[1], [0], [0], [1], [0, 0, 1, 1], [], []>} : vector<8x8xf32>, vector<8x384xf32>, vector<8x384xf32> -> vector<8x384xf32>
    %56 = arith.addf %51, %55 : vector<8x384xf32>
    %c1_44 = arith.constant 1 : index
    %c0_45 = arith.constant 0 : index
    %c0_46 = arith.constant 0 : index
    %57 = vector.load %arg4[%c1_44, %c0_45, %c0_46] : memref<3x8x8xf32, #tpu.memory_space<vmem>>, vector<1x8x8xf32>
    %58 = vector.shape_cast %57 : vector<1x8x8xf32> to vector<8x8xf32>
    %c0_47 = arith.constant 0 : index
    %c128_48 = arith.constant 128 : index
    %59 = vector.load %arg7[%c0_47, %c128_48] : memref<8x640xf32, #tpu.memory_space<vmem>>, vector<8x384xf32>
    %cst_49 = arith.constant dense<0.000000e+00> : vector<8x384xf32>
    %60 = tpu.matmul %58, %59, %cst_49 {dimension_numbers = #tpu.dot_dimension_numbers<[1], [0], [0], [1], [0, 0, 1, 1], [], []>} : vector<8x8xf32>, vector<8x384xf32>, vector<8x384xf32> -> vector<8x384xf32>
    %61 = arith.addf %56, %60 : vector<8x384xf32>
    %c2_50 = arith.constant 2 : index
    %c0_51 = arith.constant 0 : index
    %c0_52 = arith.constant 0 : index
    %62 = vector.load %arg4[%c2_50, %c0_51, %c0_52] : memref<3x8x8xf32, #tpu.memory_space<vmem>>, vector<1x8x8xf32>
    %63 = vector.shape_cast %62 : vector<1x8x8xf32> to vector<8x8xf32>
    %c0_53 = arith.constant 0 : index
    %c129_54 = arith.constant 129 : index
    %64 = vector.load %arg7[%c0_53, %c129_54] : memref<8x640xf32, #tpu.memory_space<vmem>>, vector<8x384xf32>
    %cst_55 = arith.constant dense<0.000000e+00> : vector<8x384xf32>
    %65 = tpu.matmul %63, %64, %cst_55 {dimension_numbers = #tpu.dot_dimension_numbers<[1], [0], [0], [1], [0, 0, 1, 1], [], []>} : vector<8x8xf32>, vector<8x384xf32>, vector<8x384xf32> -> vector<8x384xf32>
    %66 = arith.addf %61, %65 : vector<8x384xf32>
    %c0_56 = arith.constant 0 : index
    %c0_57 = arith.constant 0 : index
    %c0_58 = arith.constant 0 : index
    %67 = vector.load %arg1[%c0_56, %c0_57, %c0_58] : memref<2x8x128xf32, #tpu.memory_space<vmem>>, vector<1x8x128xf32>
    %68 = vector.shape_cast %67 : vector<1x8x128xf32> to vector<8x128xf32>
    %69 = vector.extract_strided_slice %66 {offsets = [0, 0], sizes = [8, 128], strides = [1, 1]} : vector<8x384xf32> to vector<8x128xf32>
    %70 = arith.addf %68, %69 : vector<8x128xf32>
    %c0_59 = arith.constant 0 : index
    %c0_60 = arith.constant 0 : index
    %c0_61 = arith.constant 0 : index
    %71 = vector.load %arg6[%c0_59, %c0_60, %c0_61] : memref<2x8x128xf32, #tpu.memory_space<vmem>>, vector<1x8x128xf32>
    %72 = vector.shape_cast %71 : vector<1x8x128xf32> to vector<8x128xf32>
    %73 = vector.shape_cast %70 : vector<8x128xf32> to vector<1x8x128xf32>
    tpu.vector_store %arg6[%c0_59, %c0_60, %c0_61], %73 {strides = array<i32>} : memref<2x8x128xf32, #tpu.memory_space<vmem>>, vector<1x8x128xf32>,
    %c1_62 = arith.constant 1 : index
    %c0_63 = arith.constant 0 : index
    %c0_64 = arith.constant 0 : index
    %74 = vector.load %arg1[%c1_62, %c0_63, %c0_64] : memref<2x8x128xf32, #tpu.memory_space<vmem>>, vector<1x8x128xf32>
    %75 = vector.shape_cast %74 : vector<1x8x128xf32> to vector<8x128xf32>
    %76 = vector.extract_strided_slice %66 {offsets = [0, 256], sizes = [8, 128], strides = [1, 1]} : vector<8x384xf32> to vector<8x128xf32>
    %77 = arith.addf %75, %76 : vector<8x128xf32>
    %c1_65 = arith.constant 1 : index
    %c0_66 = arith.constant 0 : index
    %c0_67 = arith.constant 0 : index
    %78 = vector.load %arg6[%c1_65, %c0_66, %c0_67] : memref<2x8x128xf32, #tpu.memory_space<vmem>>, vector<1x8x128xf32>
    %79 = vector.shape_cast %78 : vector<1x8x128xf32> to vector<8x128xf32>
    %80 = vector.shape_cast %77 : vector<8x128xf32> to vector<1x8x128xf32>
    tpu.vector_store %arg6[%c1_65, %c0_66, %c0_67], %80 {strides = array<i32>} : memref<2x8x128xf32, #tpu.memory_space<vmem>>, vector<1x8x128xf32>,
    return
  }
  func.func @transform_0(%arg0: i32) -> (i32, i32, i32) {
    %c0_i32 = arith.constant 0 : i32
    %c0_i32_0 = arith.constant 0 : i32
    %c0_i32_1 = arith.constant 0 : i32
    return %arg0, %c0_i32, %c0_i32_0 : i32, i32, i32
  }
  func.func @transform_1(%arg0: i32) -> (i32, i32, i32) {
    %c0_i32 = arith.constant 0 : i32
    %c0_i32_0 = arith.constant 0 : i32
    %c0_i32_1 = arith.constant 0 : i32
    %c0_i32_2 = arith.constant 0 : i32
    return %c0_i32, %c0_i32_0, %c0_i32_1 : i32, i32, i32
  }
  func.func @transform_2(%arg0: i32) -> (i32, i32) {
    %c0_i32 = arith.constant 0 : i32
    %c0_i32_0 = arith.constant 0 : i32
    %c0_i32_1 = arith.constant 0 : i32
    return %c0_i32, %c0_i32_0 : i32, i32
  }
  func.func @transform_3(%arg0: i32) -> (i32, i32, i32) {
    %c0_i32 = arith.constant 0 : i32
    %c0_i32_0 = arith.constant 0 : i32
    %c0_i32_1 = arith.constant 0 : i32
    %c0_i32_2 = arith.constant 0 : i32
    return %c0_i32, %c0_i32_0, %c0_i32_1 : i32, i32, i32
  }
  func.func @transform_4(%arg0: i32) -> (i32, i32) {
    %c0_i32 = arith.constant 0 : i32
    %c0_i32_0 = arith.constant 0 : i32
    %c0_i32_1 = arith.constant 0 : i32
    return %c0_i32, %c0_i32_0 : i32, i32
  }
  func.func @transform_5(%arg0: i32) -> (i32, i32, i32) {
    %c0_i32 = arith.constant 0 : i32
    %c0_i32_0 = arith.constant 0 : i32
    %c0_i32_1 = arith.constant 0 : i32
    return %arg0, %c0_i32, %c0_i32_0 : i32, i32, i32
  }
}

</mosaic_0001>

<bundles_post_ra>
// kernel: tpu_custom_call.1
= control target key start
LH: loop header
LB: loop body
LE: loop exit
PB: predicated region body
PF: predicated region fallthrough
CT: control target
= control target key end

     0   :  { %10 = vsyncpa [#allocation4], 0  ;;  %s1395_s0 = inlined_call_operand.vmem [shape: f32[2,8,128], index: 0, kind: input, shape index: {}]   ;;  %s1396_s1 = inlined_call_operand.hbm [shape: f32[3,8,8], index: 1, kind: input, shape index: {}]   ;;  %s1397_s2 = inlined_call_operand.vmem [shape: f32[8,1], index: 2, kind: input, shape index: {}]   ;;  %s1398_s3 = inlined_call_operand.hbm [shape: f32[3,8,8], index: 3, kind: input, shape index: {}]   ;;  %s1399_s4 = inlined_call_operand.vmem [shape: f32[8,1], index: 4, kind: input, shape index: {}]   ;;  %s1400_s5 = inlined_call_operand.hbm [shape: f32[2,8,128], index: 5, kind: output, shape index: {}]  }
   0x1   :  { %11 = vsyncpa [#allocation7], 0 }
   0x2   :  { %12 = vsyncpa [#allocation5], 0  ;;  %s1243_s18 = smov [#allocation3]  }
   0x3   :  { %s20_s19 = sshll.u32 %s1243_s18, 4  ;;  %s21_s19 = int_to_ptr.vmem [resolvable:$true] %s20_s19 }
   0x4   :  { %s1185_s20 = scalar_lea.vmem %s21_s19, 384  ;;  %p1190_p1 = scmp.lt.s32.totalorder %s21_s19, %s21_s19 }
   0x5   :  { %p1186_p0 = scmp.ne.s32.totalorder %s21_s19, %s1185_s20  ;;  %p1191_p2 = scmp.lt.s32.totalorder %s1185_s20, %s1185_s20 }
   0x7   :  { %p1192_p3 = por %p1191_p2, %p1190_p1 }
   0x9   :  { %p1193_p4 = pnand %p1192_p3, %p1186_p0 }
   0xb   :  { %1196 = shalt.err (!%p1193_p4)
}
   0xc   :  { %s1244_s21 = smov 128   ;;  %s1245_s22 = smov 8  }
   0xd   :  { %26 = dma.hbm_to_vmem [thread:$0]  %s1396_s1, 384, %s21_s19, [#allocation4], %s1244_s21, %s1244_s21, %s1245_s22  }
   0xe   :  { %s1246_s25 = smov [#allocation6]  }
   0xf   :  { %s34_s26 = sshll.u32 %s1246_s25, 4  ;;  %s35_s26 = int_to_ptr.vmem [resolvable:$true] %s34_s26 }
  0x10   :  { %s1205_s27 = scalar_lea.vmem %s35_s26, 384  ;;  %p1210_p6 = scmp.lt.s32.totalorder %s35_s26, %s35_s26 }
  0x11   :  { %p1206_p5 = scmp.ne.s32.totalorder %s35_s26, %s1205_s27  ;;  %p1211_p7 = scmp.lt.s32.totalorder %s1205_s27, %s1205_s27 }
  0x13   :  { %p1212_p8 = por %p1211_p7, %p1210_p6 }
  0x15   :  { %p1213_p9 = pnand %p1212_p8, %p1206_p5 }
  0x17   :  { %1216 = shalt.err (!%p1213_p9)
}
  0x18   :  { %40 = dma.hbm_to_vmem [thread:$0]  %s1398_s3, 384, %s35_s26, [#allocation7], %s1244_s21, %s1244_s21, %s1245_s22  }
  0x19   :  { %1237 = dma.done.wait [#allocation4], 384  }
  0x1a   :  { %1238 = vsyncadd [#allocation4], 4294966912 }
  0x1b   :  { %1239 = dma.done.wait [#allocation7], 384  }
  0x1c   :  { %1240 = vsyncadd [#allocation7], 4294966912  ;;  %v1247_v0 = vmov 0.0   ;;  %vm1248_vm0 = vmmov 0   ;;  %v1302_v1 = vld [vmem:[%s1395_s0] sm:$0xff]  ;;  %v1307_v2 = vld [vmem:[%s1395_s0 + $0x8] sm:$0xff]  ;;  %v52_v31 = vlaneseq }
  0x1d   :  { %1110 = vmatprep.subr.mxu1 %v1247_v0  ;;  %160 = vmatprep.mubr.f32.mxu0 %v1247_v0  ;;  %v56_v3 = vmax.f32 %v1302_v1, 0.0  ;;  %v60_v4 = vmax.f32 %v1307_v2, 0.0  ;;  %s1249_s7 = smov 1   ;;  %s1250_s8 = smov 127   ;;  %v1251_v5 = vmov 0   ;;  %v62_v6 = vld [vmem:[%s1397_s2] sm:$0xff] }
  0x1e   :  { %1112 = vmatprep.mubr.msk.f32.mxu1 %vm1248_vm0, %v1247_v0  ;;  %1165 = vset.pattern.permute.xlu1 %v1251_v5  ;;  %vm85_vm1 = vcmask 7168   ;;  %v68_v13 = vld [vmem:[#allocation3] sm:$0xff]  ;;  %vm92_vm2 = vcmask 64512   ;;  %vm403_vm3 = vcmask 1039360   ;;  %v239_v20 = vld [vmem:[#allocation3 + $0x8] sm:$0xff]  ;;  %v386_v24 = vld [vmem:[#allocation3 + $0x10] sm:$0xff] }
  0x1f   :  { %79 = vrot.lane.b32.xlu0 %v56_v3, %s1249_s7  ;;  %83 = vrot.lane.b32.xlu1 %v60_v4, %s1249_s7  ;;  %v53_v38 = vand.u32 127, %v52_v31  ;;  %v563_v50 = vld [vmem:[%s1399_s4] sm:$0xff]  ;;  %v569_v58 = vld [vmem:[#allocation6] sm:$0xff]  ;;  %s1252_s4 = smov [#allocation8]  }
  0x20   :  { %1176 = vset.pattern.permute.xlu0 %v1251_v5  ;;  %v738_v62 = vld [vmem:[#allocation6 + $0x8] sm:$0xff]  ;;  %s1065_s11 = sshll.u32 %s1252_s4, 4  ;;  %s1066_s11 = int_to_ptr.vmem [resolvable:$true] %s1065_s11 }
  0x21   :  { %vm54_vm4 = vcmp.lt.s32.totalorder %v53_v38, 16  ;;  %s1217_s12 = scalar_lea.vmem %s1066_s11, 256  ;;  %p1222_p11 = scmp.lt.s32.totalorder %s1066_s11, %s1066_s11 }
  0x22   :  { %p1218_p10 = scmp.ne.s32.totalorder %s1066_s11, %s1217_s12  ;;  %p1223_p12 = scmp.lt.s32.totalorder %s1217_s12, %s1217_s12 }
  0x23   :  { %1161 = vrot.lane.b32.xlu0 %v1247_v0, %s1249_s7  ;;  %397 = vrot.lane.b32.xlu1 %v1247_v0, %s1250_s8 }
  0x24   :  { %p1224_p13 = por %p1223_p12, %p1222_p11 }
  0x26   :  { %p1225_p0 = pnand %p1224_p13, %p1218_p10 }
  0x27   :  { %399 = vrot.lane.b32.xlu0 %v60_v4, %s1250_s8  ;;  %395 = vrot.lane.b32.xlu1 %v56_v3, %s1250_s8 }
  0x2b   :  { %401 = vrot.lane.b32.xlu0 %v1247_v0, %s1250_s8  ;;  %65 = vperm.xlu1 %1165, %v62_v6  }
  0x2f   :  { %1167 = vrot.lane.b32.xlu1 %v1247_v0, %s1249_s7 }
  0x33   :  { %1172 = vrot.lane.b32.xlu1 %v1247_v0, %s1250_s8 }
  0x91   :  { %v80_v7 = vpop.permute.xlu0 %79  ;;  %v84_v8 = vpop.permute.xlu1 %83 }
  0x95   :  { %v1162_v9 = vpop.permute.xlu0 %1161  ;;  %v398_v10 = vpop.permute.xlu1 %397 }
  0x96   :  { %v1164_v11 = vunpack.i.h.bf16 %v1162_v9  ;;  %v1163_v12 = vunpack.i.l.bf16 %v1162_v9 }
  0x98   :  { %v87_v14 = vsel %vm85_vm1, %v80_v7, %v1163_v12  ;;  %v88_v15 = vsel %vm85_vm1, %v1163_v12, %v84_v8  ;;  %v86_v16 = vsel %vm85_vm1, %v1164_v11, %v80_v7  ;;  %v885_v7 = vld [vmem:[#allocation6 + $0x10] sm:$0xff] }
  0x99   :  { %126 = vmatprep.subr.mxu0 %v87_v14  ;;  %1111 = vmatpush3.msra.mxu1 %v88_v15  ;;  %v400_v17 = vpop.permute.xlu0 %399  ;;  %v396_v18 = vpop.permute.xlu1 %395 }
  0x9a   :  { %127 = vmatpush1.msra.mxu0 %v86_v16  ;;  %1113 = vmatmul.mubr.msk.f32.vlgmr.msra.gmra.mxu1 %vm92_vm2, %v68_v13  ;;  %v405_v19 = vsel %vm403_vm3, %v398_v10, %v400_v17  ;;  %v404_v21 = vsel %vm403_vm3, %v396_v18, %v398_v10 }
  0x9b   :  { %1079 = vmatmul.mubr.msk.f32.vlgmr.msra.gmra.mxu0 %vm92_vm2, %v68_v13  ;;  %1115 = vmatprep.subr.mxu0 %v1247_v0 }
  0x9c   :  { %1116 = vmatpush3.msra.mxu0 %v56_v3  ;;  %1120 = vmatprep.subr.mxu1 %v1247_v0 }
  0x9d   :  { %1117 = vmatprep.mubr.msk.f32.mxu0 %vm1248_vm0, %v1247_v0  ;;  %1121 = vmatpush3.msra.mxu1 %v60_v4  ;;  %v402_v22 = vpop.permute.xlu0 %401 }
  0x9e   :  { %1122 = vmatprep.mubr.msk.f32.mxu1 %vm1248_vm0, %v1247_v0  ;;  %443 = vmatprep.subr.mxu0 %v405_v19  ;;  %v406_v23 = vsel %vm403_vm3, %v400_v17, %v402_v22 }
  0x9f   :  { %1118 = vmatmul.mubr.msk.f32.vlgmr.msra.gmra.mxu0 %vm92_vm2, %v239_v20  ;;  %1123 = vmatmul.mubr.msk.f32.vlgmr.msra.gmra.mxu1 %vm92_vm2, %v239_v20 }
  0xa0   :  { %444 = vmatpush1.msra.mxu0 %v404_v21  ;;  %1125 = vmatprep.subr.mxu1 %v1247_v0 }
  0xa1   :  { %1126 = vmatpush3.msra.mxu1 %v406_v23  ;;  %477 = vmatprep.mubr.f32.mxu0 %v1247_v0 }
  0xa2   :  { %1127 = vmatprep.mubr.msk.f32.mxu1 %vm1248_vm0, %v1247_v0  ;;  %1130 = vmatprep.subr.mxu1 %v1247_v0 }
  0xa3   :  { %1083 = vmatmul.mubr.msk.f32.vlgmr.msra.gmra.mxu0 %vm92_vm2, %v386_v24  ;;  %1128 = vmatmul.mubr.msk.f32.vlgmr.msra.gmra.mxu1 %vm92_vm2, %v386_v24 }
  0xa4   :  { %659 = vmatprep.mubr.f32.mxu0 %v1247_v0  ;;  %1132 = vmatprep.mubr.msk.f32.mxu1 %vm1248_vm0, %v1247_v0 }
  0xa6   :  { %v66_v26 = vpop.permute.xlu1 %65 }
  0xaa   :  { %v1168_v51 = vpop.permute.xlu1 %1167 }
  0xab   :  { %v1170_v52 = vunpack.i.h.bf16 %v1168_v51  ;;  %v1169_v53 = vunpack.i.l.bf16 %v1168_v51 }
  0xae   :  { %v1173_v55 = vpop.permute.xlu1 %1172 }
  0xaf   :  { %v1175_v60 = vunpack.i.h.bf16 %v1173_v55  ;;  %v1174_v63 = vunpack.i.l.bf16 %v1173_v55 }
 0x15a   :  { %v232_v25 = vpop.f32.mrf.mxu1 }
 0x15b   :  { %v162_v27 = vpop.f32.mrf.mxu0  ;;  %v237_v28 = vadd.f32 %v232_v25, %v66_v26 }
 0x15c   :  { %v1114_v29 = vpop.f32.mrf.mxu1  ;;  %v236_v34 = vadd.f32 %v162_v27, %v66_v26 }
 0x15d   :  { %v164_v30 = vpop.f32.mrf.mxu0 }
 0x15f   :  { %v309_v32 = vpop.f32.mrf.mxu0  ;;  %v379_v33 = vpop.f32.mrf.mxu1 }
 0x160   :  { %v384_v35 = vadd.f32 %v379_v33, %v237_v28  ;;  %v383_v39 = vadd.f32 %v309_v32, %v236_v34 }
 0x161   :  { %v1119_v36 = vpop.f32.mrf.mxu0  ;;  %v1124_v37 = vpop.f32.mrf.mxu1 }
 0x163   :  { %v479_v40 = vpop.f32.mrf.mxu0  ;;  %v549_v41 = vpop.f32.mrf.mxu1 }
 0x164   :  { %v553_v42 = vadd.f32 %v479_v40, %v383_v39  ;;  %v554_v43 = vadd.f32 %v549_v41, %v384_v35 }
 0x165   :  { %v481_v44 = vpop.f32.mrf.mxu0  ;;  %v1129_v45 = vpop.f32.mrf.mxu1 }
 0x166   :  { %v555_v46 = vmax.f32 %v553_v42, 0.0  ;;  %v556_v47 = vmax.f32 %v554_v43, 0.0 }
 0x168   :  { %v559_v48 = vsel %vm54_vm4, %v555_v46, 0.0  ;;  %v561_v49 = vsel %vm54_vm4, %v556_v47, 0.0 }
 0x169   :  { %894 = vrot.lane.b32.xlu1 %v559_v48, %s1250_s8  ;;  %580 = vrot.lane.b32.xlu0 %v559_v48, %s1249_s7 }
 0x16d   :  { %584 = vrot.lane.b32.xlu0 %v561_v49, %s1249_s7 }
 0x171   :  { %898 = vrot.lane.b32.xlu0 %v561_v49, %s1250_s8 }
 0x175   :  { %566 = vperm.xlu0 %1176, %v563_v50  }
 0x1db   :  { %v581_v54 = vpop.permute.xlu0 %580  ;;  %v895_v3 = vpop.permute.xlu1 %894 }
 0x1dc   :  { %v586_v56 = vsel %vm85_vm1, %v1170_v52, %v581_v54  ;;  %v587_v57 = vsel %vm85_vm1, %v581_v54, %v1169_v53  ;;  %v902_v8 = vsel %vm403_vm3, %v895_v3, %v1174_v63 }
 0x1dd   :  { %625 = vmatprep.subr.mxu0 %v587_v57 }
 0x1de   :  { %626 = vmatpush1.msra.mxu0 %v586_v56 }
 0x1df   :  { %1135 = vmatprep.subr.mxu0 %v1247_v0  ;;  %v585_v59 = vpop.permute.xlu0 %584  ;;  %1085 = vmatmul.mubr.msk.f32.vlgmr.msra.gmra.mxu0 %vm92_vm2, %v569_v58 }
 0x1e0   :  { %v588_v61 = vsel %vm85_vm1, %v1169_v53, %v585_v59  ;;  %1136 = vmatpush3.msk.msra.mxu0 %vm54_vm4, %v555_v46  ;;  %1137 = vmatprep.mubr.msk.f32.mxu0 %vm1248_vm0, %v1247_v0 }
 0x1e1   :  { %1131 = vmatpush3.msra.mxu1 %v588_v61 }
 0x1e2   :  { %1133 = vmatmul.mubr.msk.f32.vlgmr.msra.gmra.mxu1 %vm92_vm2, %v569_v58  ;;  %1140 = vmatprep.subr.mxu1 %v1247_v0 }
 0x1e3   :  { %1141 = vmatpush3.msk.msra.mxu1 %vm54_vm4, %v556_v47  ;;  %v899_v4 = vpop.permute.xlu0 %898  ;;  %1138 = vmatmul.mubr.msk.f32.vlgmr.msra.gmra.mxu0 %vm92_vm2, %v738_v62 }
 0x1e4   :  { %v904_v5 = vsel %vm403_vm3, %v899_v4, %v1175_v60  ;;  %1142 = vmatprep.mubr.msk.f32.mxu1 %vm1248_vm0, %v1247_v0  ;;  %v903_v6 = vsel %vm403_vm3, %v1174_v63, %v899_v4  ;;  %1145 = vmatprep.subr.mxu1 %v1247_v0 }
 0x1e5   :  { %941 = vmatprep.subr.mxu0 %v903_v6  ;;  %975 = vmatprep.mubr.f32.mxu0 %v1247_v0 }
 0x1e6   :  { %1143 = vmatmul.mubr.msk.f32.vlgmr.msra.gmra.mxu1 %vm92_vm2, %v738_v62  ;;  %942 = vmatpush1.msra.mxu0 %v902_v8 }
 0x1e7   :  { %1146 = vmatpush3.msra.mxu1 %v904_v5  ;;  %1089 = vmatmul.mubr.msk.f32.vlgmr.msra.gmra.mxu0 %vm92_vm2, %v885_v7 }
 0x1e8   :  { %1147 = vmatprep.mubr.msk.f32.mxu1 %vm1248_vm0, %v1247_v0 }
 0x1ea   :  { %1148 = vmatmul.mubr.msk.f32.vlgmr.msra.gmra.mxu1 %vm92_vm2, %v885_v7 }
 0x1f0   :  { %v567_v9 = vpop.permute.xlu0 %566 }
 0x29f   :  { %v661_v10 = vpop.f32.mrf.mxu0 }
 0x2a0   :  { %v735_v11 = vadd.f32 %v661_v10, %v567_v9 }
 0x2a1   :  { %v663_v12 = vpop.f32.mrf.mxu0 }
 0x2a2   :  { %v731_v13 = vpop.f32.mrf.mxu1 }
 0x2a3   :  { %v808_v14 = vpop.f32.mrf.mxu0  ;;  %v736_v19 = vadd.f32 %v731_v13, %v567_v9 }
 0x2a4   :  { %v1134_v15 = vpop.f32.mrf.mxu1  ;;  %v882_v16 = vadd.f32 %v808_v14, %v735_v11 }
 0x2a5   :  { %v1139_v17 = vpop.f32.mrf.mxu0 }
 0x2a6   :  { %v878_v18 = vpop.f32.mrf.mxu1 }
 0x2a7   :  { %v977_v20 = vpop.f32.mrf.mxu0  ;;  %v883_v23 = vadd.f32 %v878_v18, %v736_v19 }
 0x2a8   :  { %v1144_v21 = vpop.f32.mrf.mxu1  ;;  %v1051_v22 = vadd.f32 %v977_v20, %v882_v16 }
 0x2a9   :  { %v979_v24 = vpop.f32.mrf.mxu0 }
 0x2aa   :  { %v1054_v0 = vadd.f32 %v1051_v22, %v1302_v1  ;;  %v1047_v25 = vpop.f32.mrf.mxu1 }
 0x2ab   :  { %v1052_v26 = vadd.f32 %v1047_v25, %v883_v23 }
 0x2ac   :  { %1055 = vst [vmem:[#allocation8] sm:$0xff] %v1054_v0  ;;  %v1149_v27 = vpop.f32.mrf.mxu1 }
 0x2ad   :  { %v1057_v28 = vadd.f32 %v1307_v2, %v1052_v26 }
 0x2af   :  { %1059 = vst [vmem:[#allocation8 + $0x8] sm:$0xff] %v1057_v28 }
 0x2b0   :  { %1228 = shalt.err (!%p1225_p0)
}
 0x2b1   :  { %1071 = dma.vmem_to_hbm [thread:$0]  %s1066_s11, 256, %s1400_s5, [#allocation5], %s1244_s21, %s1244_s21, %s1245_s22  }
 0x2b2   :  { %1241 = dma.done.wait [#allocation5], 256  }
 0x2b3   :  { %1242 = vsyncadd [#allocation5], 4294967040 }
 0x2b4   :  { %1075 = vsyncpa [#allocation4], 1 }
 0x2b5   :  { %1076 = vsyncpa [#allocation7], 1 }
 0x2b6   :  { %1077 = vsyncpa [#allocation5], 1 }

</bundles_post_ra>
